<compile_context>
chip_gen: v5e
topology: v5e:2x2
jax: 0.10.0
libtpu: 0.0.40
codegen_flags: <defaults>
</compile_context>

<pallas_src>
import jax
import jax.numpy as jnp
from jax.experimental import pallas as pl
from jax.experimental.pallas import tpu as pltpu


def _voting_kernel(w_ref, x_ref, o_ref):
    # w_ref: (1, C*T)     per-(codebook, topk) weight row, 1/(C*S) folded in
    # x_ref: (C*T, TILE)  current (batch, lane-tile) slab, lane-dense
    # o_ref: (1, TILE)    partial sums for this (batch, lane-tile)
    o_ref[...] = jnp.dot(w_ref[...], x_ref[...],
                         preferred_element_type=jnp.float32)


def _choose_lane_tile(ct, vs, budget_bytes=8 * 1024 * 1024):
    """Largest divisor of `vs` whose (ct, tile) f32 slab fits `budget_bytes`,
    preferring lane-aligned (multiple-of-128) tiles.  Full width if it fits."""
    if ct * vs * 4 <= budget_bytes:
        return vs
    fits = [d for d in range(vs, 0, -1) if vs % d == 0 and ct * d * 4 <= budget_bytes]
    if not fits:
        return vs
    for d in fits:
        if d % 128 == 0:
            return d
    return fits[0]


def codebook_voting_logits_decoder(x, weights):
    """Forward pass of CodebookVotingLogitsDecoder.

    x:       (B, C, T, V, *spatial) float32   ('b c t v ...')
    weights: (T,) float32 (the registered 'weights' buffer, ones(topk))
    returns: (B, V) float32
    """
    B, C, T, V = x.shape[:4]
    S = 1
    for d in x.shape[4:]:
        S *= d
    CT, VS = C * T, V * S

    # Pure dim-merge (no transpose, no HBM copy): x[b, c*T+t, v*S+s] == x[b,c,t,v,s...]
    x_flat = jnp.asarray(x, jnp.float32).reshape(B, CT, VS)

    # w_row[c*T + t] = w[t] / (C*S): topk weights repeated per codebook, with the
    # 'mean over n = (spatial, codebooks)' normalization folded in on the host.
    w = jnp.asarray(weights, jnp.float32)
    w_row = (jnp.tile(w, C) / jnp.float32(C * S)).reshape(1, CT)

    tile = _choose_lane_tile(CT, VS)
    grid = (B, VS // tile)

    q = pl.pallas_call(
        _voting_kernel,
        out_shape=jax.ShapeDtypeStruct((B, 1, VS), jnp.float32),
        grid_spec=pltpu.PrefetchScalarGridSpec(
            num_scalar_prefetch=0,
            grid=grid,
            in_specs=[
                # Tiny resident weight row (same block every step -> no re-DMA).
                pl.BlockSpec((1, CT), lambda b, j: (0, 0)),
                # Per-(batch, lane-tile) slab; batch dim squeezed out of the ref.
                pl.BlockSpec((None, CT, tile), lambda b, j: (b, 0, j)),
            ],
            # Each grid step owns its output block -> both axes legally parallel.
            out_specs=pl.BlockSpec((None, 1, tile), lambda b, j: (b, 0, j)),
        ),
        compiler_params=pltpu.CompilerParams(
            dimension_semantics=("parallel", "parallel"),
            vmem_limit_bytes=32 * 1024 * 1024),
    )(w_row, x_flat)

    # Tiny final fold over the spatial group: (B, 1, V*S) -> (B, V, S) -> sum_s.
    return q.reshape(B, V, S).sum(axis=-1)


if __name__ == "__main__":
    # Module hyperparameters (deterministic, in-script):
    #   dim_values = class_nums = 32, topk = 8, ff_dropout = 0.0
    B, C, T, V = 2, 4, 8, 32          # batch, codebooks, topk, class_nums
    H, W = 4, 4                       # trailing '...' spatial dims

    key = jax.random.PRNGKey(0)
    x = jax.random.normal(key, (B, C, T, V, H, W), dtype=jnp.float32)
    weights = jnp.ones((T,), dtype=jnp.float32)   # register_buffer('weights', ones(topk))
    # NOTE: Dropout1d(p=0.0) is an identity and is therefore a no-op here.

    out = jax.block_until_ready(codebook_voting_logits_decoder(x, weights))
    assert out.shape == (B, V) and out.dtype == jnp.float32

    # Pure-JAX reference for the exact PyTorch semantics.
    ref = jnp.mean(jnp.einsum('bctvhw,t->bcvhw', x, weights), axis=(1, 3, 4))
    assert jnp.allclose(out, ref, atol=1e-4, rtol=1e-4)

    print("KERNEL_OK")
</pallas_src>

<mosaic_0001>
module attributes {stable_mosaic.version = 11 : i64} {
  func.func @_voting_kernel(%arg0: i32, %arg1: i32, %arg2: memref<1x32xf32, #tpu.memory_space<vmem>>, %arg3: memref<1x32x512xf32, #tpu.memory_space<vmem>>, %arg4: memref<1x1x512xf32, #tpu.memory_space<vmem>>) attributes {dimension_semantics = [#tpu.dimension_semantics<parallel>, #tpu.dimension_semantics<parallel>], iteration_bounds = array<i64: 2, 1>, scalar_prefetch = 0 : i64, scratch_operands = 0 : i64, tpu.core_type = #tpu.core_type<tc>, window_params = [{pipeline_mode = #tpu.pipeline_mode<synchronous>, transform_indices = @transform_0, window_bounds = array<i64: 1, 32>}, {transform_indices = @transform_1, window_bounds = array<i64: 1, 32, 512>}, {transform_indices = @transform_2, window_bounds = array<i64: 1, 1, 512>}]} {
    %c0 = arith.constant 0 : index
    %c0_0 = arith.constant 0 : index
    %0 = vector.load %arg2[%c0, %c0_0] : memref<1x32xf32, #tpu.memory_space<vmem>>, vector<1x32xf32>
    %c0_1 = arith.constant 0 : index
    %c0_2 = arith.constant 0 : index
    %c0_3 = arith.constant 0 : index
    %1 = vector.load %arg3[%c0_1, %c0_2, %c0_3] : memref<1x32x512xf32, #tpu.memory_space<vmem>>, vector<1x32x512xf32>
    %2 = vector.shape_cast %1 : vector<1x32x512xf32> to vector<32x512xf32>
    %cst = arith.constant dense<0.000000e+00> : vector<1x512xf32>
    %3 = tpu.matmul %0, %2, %cst {dimension_numbers = #tpu.dot_dimension_numbers<[1], [0], [0], [1], [0, 0, 1, 1], [], []>} : vector<1x32xf32>, vector<32x512xf32>, vector<1x512xf32> -> vector<1x512xf32>
    %c0_4 = arith.constant 0 : index
    %c0_5 = arith.constant 0 : index
    %c0_6 = arith.constant 0 : index
    %4 = vector.load %arg4[%c0_4, %c0_5, %c0_6] : memref<1x1x512xf32, #tpu.memory_space<vmem>>, vector<1x1x512xf32>
    %5 = vector.shape_cast %4 : vector<1x1x512xf32> to vector<1x512xf32>
    %6 = vector.shape_cast %3 : vector<1x512xf32> to vector<1x1x512xf32>
    tpu.vector_store %arg4[%c0_4, %c0_5, %c0_6], %6 {strides = array<i32>} : memref<1x1x512xf32, #tpu.memory_space<vmem>>, vector<1x1x512xf32>,
    return
  }
  func.func @transform_0(%arg0: i32, %arg1: i32) -> (i32, i32) {
    %c0_i32 = arith.constant 0 : i32
    %c0_i32_0 = arith.constant 0 : i32
    %c0_i32_1 = arith.constant 0 : i32
    return %c0_i32, %c0_i32_0 : i32, i32
  }
  func.func @transform_1(%arg0: i32, %arg1: i32) -> (i32, i32, i32) {
    %c0_i32 = arith.constant 0 : i32
    %c0_i32_0 = arith.constant 0 : i32
    return %arg0, %c0_i32, %arg1 : i32, i32, i32
  }
  func.func @transform_2(%arg0: i32, %arg1: i32) -> (i32, i32, i32) {
    %c0_i32 = arith.constant 0 : i32
    %c0_i32_0 = arith.constant 0 : i32
    return %arg0, %c0_i32, %arg1 : i32, i32, i32
  }
}

</mosaic_0001>

<bundles_post_ra>
// kernel: tpu_custom_call.1
= control target key start
LH: loop header
LB: loop body
LE: loop exit
PB: predicated region body
PF: predicated region fallthrough
CT: control target
= control target key end

     0   :  { %7 = vsyncpa [#allocation3], 0  ;;  %s868_s0 = inlined_call_operand.hbm [shape: f32[1,32], index: 0, kind: input, shape index: {}]   ;;  %s869_s1 = inlined_call_operand.hbm [shape: f32[2,32,512], index: 1, kind: input, shape index: {}]   ;;  %s870_s2 = inlined_call_operand.hbm [shape: f32[2,1,512], index: 2, kind: output, shape index: {}]  }
   0x1   :  { %8 = vsyncpa [#allocation6], 0 }
   0x2   :  { %10 = vsyncpa [#allocation6 + $0x1], 0 }
   0x3   :  { %11 = vsyncpa [#allocation4], 0 }
   0x4   :  { %13 = vsyncpa [#allocation4 + $0x1], 0  ;;  %s694_s9 = smov 0   ;;  %s696_s10 = smov 0  }
   0x5   :  { %s698_s11 = smov 0   ;;  %s700_s12 = smov 0  }
   0x6   :  { %s702_s13 = smov 0   ;;  %s704_s14 = smov 0  }
   0x7 LB: > { %s432_s15 = sadd.s32 4294967295, %s674_s14   ;;  %s433_s16 = sadd.s32 4294967294, %s674_s14   ;;  %s674_s14 = sphi %s704_s14, %s19_s14   ;;  %s670_s13 = sphi %s702_s13, %s882_s13   ;;  %s666_s12 = sphi %s700_s12, %s881_s12   ;;  %s662_s11 = sphi %s698_s11, %s880_s11   ;;  %s658_s10 = sphi %s696_s10, %s879_s10   ;;  %s654_s9 = sphi %s694_s9, %s878_s9  }
   0x8   : > { %s61_s17 = sadd.s32 1, %s662_s11  ;;  %p68_p0 = scmp.ne.s32.totalorder %s662_s11, %s658_s10 }
   0x9   : > { %p69_p1 = scmp.eq.s32.totalorder %s674_s14, 0  ;;  %p74_p2 = scmp.ne.s32.totalorder %s658_s10, %s654_s9 }
   0xa   : > { %p732_p3 = scmp.eq.s32.totalorder %s432_s15, 0  ;;  %p100_p4 = scmp.eq.s32.totalorder %s432_s15, 1 }
   0xb   : > { %p736_p5 = por %p69_p1, %p68_p0  ;;  %p106_p6 = scmp.eq.s32.totalorder %s433_s16, 1 }
   0xc   : > { %p742_p7 = por %p732_p3, %p74_p2  ;;  %p746_p8 = por %p100_p4, %p68_p0 }
   0xd   : > { %p750_p9 = por %p106_p6, %p74_p2  ;;  %p434_p10 = scmp.ge.s32.totalorder %s674_s14, 1 }
   0xe   : > { %p113_p11 = scmp.lt.s32.totalorder %s674_s14, 3  ;;  %s125_s25 = sshll.u32 %s868_s0, 4  ;;  %s126_s25 = int_to_ptr.hbm [resolvable:$true] %s125_s25 }
   0xf   : > { %s676_s27 = smov [#allocation2]   ;;  %p436_p13 = scmp.ge.s32.totalorder %s674_s14, 2 }
  0x10   : > { %p759_p12 = pnand %p434_p10, %p113_p11  ;;  %s127_s28 = sshll.u32 %s676_s27, 4  ;;  %s128_s28 = int_to_ptr.vmem [resolvable:$true] %s127_s28 }
  0x11   : > { %p474_p1 = scmp.lt.s32.totalorder %s674_s14, 2  ;;  %s31_s30 = sadd.s32 1, %s670_s13 }
  0x12   : > { %p461_p0 = pneg %p759_p12  ;;  %p33_p6 = scmp.ge.s32.totalorder %s31_s30, 2 }
  0x13   : > { %p771_p4 = pnand %p474_p1, %p736_p5  ;;  %s138_s3 = sand.u32 1, %s662_s11  }
  0x14   : > { %p462_p2 = pnand %p461_p0, %p732_p3  ;;  %s884_s30 = smov (%p33_p6, %s31_s30), 0 }
  0x15   : > { %s437_s4 = sshll.u32 %s138_s3, 7  ;;  %s56_s5 = ssub.s32 %s670_s13, %s884_s30 }
  0x16   : > { %464 = dma.hbm_to_vmem [thread:$0]  (!%p462_p2), %s126_s25, 16, %s128_s28, [#allocation3]  }
  0x17   : > { %p59_p10 = scmp.eq.s32.totalorder %s56_s5, 0  ;;  %s452_s6 = sshll.u32 %s670_s13, 7 }
  0x18   : > { %s149_s15 = scalar_lea.hbm %s869_s1, %s452_s6  ;;  %s142_s16 = scalar_lea.vmem [#allocation5], %s437_s4 }
  0x19   : > { %s152_s19 = sshll.u32 %s142_s16, 4  ;;  %s150_s24 = sshll.u32 %s149_s15, 4  ;;  %s153_s19 = int_to_ptr.vmem [resolvable:$true] %s152_s19  ;;  %s151_s24 = int_to_ptr.hbm [resolvable:$true] %s150_s24 }
  0x1a   : > { %s788_s23 = scalar_select %p59_p10, %s662_s11, %s61_s17  }
  0x1b   : > { %s139_s25 = scalar_lea.sflag [#allocation6], %s138_s3  ;;  %s677_s27 = smov 512  }
  0x1c   : > { %s678_s28 = smov 32   ;;  %164 = sbr.rel (%p759_p12) target bundleno = 185 (0xb9), region = 28 }
  0x1d   : > { %468 = dma.hbm_to_vmem [thread:$0]  (!%p771_p4), %s151_s24, 2048, %s153_s19, %s139_s25, %s677_s27, %s677_s27, %s678_s28  }
  0x21   : > { %641 = dma.done.wait (%p732_p3), [#allocation3], 16  }
  0x22   : > { %643 = vsyncadd (%p732_p3), [#allocation3], 4294967280  ;;  %s799_s17 = sand.u32 1, %s658_s10  }
  0x23   : > { %s442_s3 = sshll.u32 %s799_s17, 7  ;;  %s172_s4 = scalar_lea.sflag [#allocation6], %s799_s17 }
  0x24   : > { %s803_s5 = scalar_lea.vmem [#allocation5], %s442_s3 }
  0x25   : > { %645 = dma.done.wait (%p742_p7), %s172_s4, 2048  }
  0x26   : > { %647 = vsyncadd (%p742_p7), %s172_s4, 4294965248  ;;  %v214_v0 = vld [vmem:[%s803_s5 + $0x70] sm:$0xff]  ;;  %v215_v1 = vld [vmem:[%s803_s5 + $0x78] sm:$0xff]  ;;  %vm216_vm0 = vcmask 261120   ;;  %s443_s18 = sshll.u32 %s799_s17, 2  ;;  %s449_s20 = sshll.u32 %s666_s12, 2  ;;  %v314_v19 = vlaneseq }
  0x27   : > { %v210_v2 = vld [vmem:[%s803_s5 + $0x50] sm:$0xff]  ;;  %272 = vmatpush.msra.mxu2 %v214_v0  ;;  %292 = vmatpush.msra.mxu3 %v215_v1  ;;  %v211_v3 = vld [vmem:[%s803_s5 + $0x58] sm:$0xff]  ;;  %v213_v6 = vld [vmem:[%s803_s5 + $0x68] sm:$0xff]  ;;  %s332_s6 = scalar_lea.hbm %s870_s2, %s449_s20  ;;  %vm307_vm1 = vcmask 1040384   ;;  %vm309_vm2 = vcmask 1042434   ;;  %s196_s7 = scalar_lea.vmem [#allocation7], %s443_s18 }
  0x28   : > { %v206_v4 = vld [vmem:[%s803_s5 + $0x30] sm:$0xff]  ;;  %v207_v5 = vld [vmem:[%s803_s5 + $0x38] sm:$0xff]  ;;  %v212_v7 = vld [vmem:[%s803_s5 + $0x60] sm:$0xff]  ;;  %252 = vmatpush.msra.mxu1 %v213_v6  ;;  %s334_s8 = sshll.u32 %s196_s7, 4  ;;  %s336_s15 = sshll.u32 %s332_s6, 4  ;;  %vm311_vm3 = vcmask 1041408   ;;  %s335_s8 = int_to_ptr.vmem [resolvable:$true] %s334_s8  ;;  %s337_s15 = int_to_ptr.hbm [resolvable:$true] %s336_s15 }
  0x29   : > { %273 = vmatpush.msra.mxu2 %v210_v2  ;;  %293 = vmatpush.msra.mxu3 %v211_v3  ;;  %v209_v8 = vld [vmem:[%s803_s5 + $0x48] sm:$0xff]  ;;  %v202_v9 = vld [vmem:[%s803_s5 + $0x10] sm:$0xff]  ;;  %v203_v10 = vld [vmem:[%s803_s5 + $0x18] sm:$0xff]  ;;  %vm316_vm4 = vcmp.lt.s32.totalorder %v314_v19, 512  ;;  %s320_s12 = scalar_lea.sflag [#allocation4], %s799_s17  ;;  %s602_s16 = sshra.s32 %s337_s15, 4  ;;  %s603_s16 = int_to_ptr.hbm [resolvable:$true] %s602_s16 }
  0x2a   : > { %232 = vmatpush.msra.mxu0 %v212_v7  ;;  %v208_v11 = vld [vmem:[%s803_s5 + $0x40] sm:$0xff]  ;;  %v199_v12 = vld [vmem:[#allocation2] sm:$0x1]  ;;  %253 = vmatpush.msra.mxu1 %v209_v8  ;;  %v205_v13 = vld [vmem:[%s803_s5 + $0x28] sm:$0xff]  ;;  %s604_s19 = scalar_lea.hbm %s603_s16, 4  ;;  %s608_s27 = scalar_lea.hbm %s870_s2, 8 }
  0x2b   : > { %274 = vmatpush.msra.mxu2 %v206_v4  ;;  %294 = vmatpush.msra.mxu3 %v207_v5  ;;  %v204_v14 = vld [vmem:[%s803_s5 + $0x20] sm:$0xff]  ;;  %v201_v15 = vld [vmem:[%s803_s5 + $0x8] sm:$0xff]  ;;  %p605_p3 = scmp.ne.s32.totalorder %s603_s16, %s604_s19  ;;  %p609_p11 = scmp.lt.s32.totalorder %s603_s16, %s870_s2 }
  0x2c   : > { %233 = vmatpush.msra.mxu0 %v208_v11  ;;  %v200_v16 = vld [vmem:[%s803_s5] sm:$0xff]  ;;  %254 = vmatpush.msra.mxu1 %v205_v13  ;;  %p610_p12 = scmp.lt.s32.totalorder %s608_s27, %s604_s19 }
  0x2d   : > { %275 = vmatpush.msra.mxu2 %v202_v9  ;;  %295 = vmatpush.msra.mxu3 %v203_v10  ;;  %p606_p5 = pnand %p605_p3, %p746_p8 }
  0x2e   : > { %446 = vmatmul.msk.f32.vlgmr.msra.gmra.mxu2 %vm216_vm0, %v199_v12  ;;  %447 = vmatmul.msk.f32.vlgmr.msra.gmra.mxu3 %vm216_vm0, %v199_v12  ;;  %p611_p0 = por %p610_p12, %p609_p11 }
  0x2f   : > { %234 = vmatpush.msra.mxu0 %v204_v14  ;;  %255 = vmatpush.msra.mxu1 %v201_v15  ;;  %p607_p7 = pneg %p606_p5 }
  0x30   : > { %445 = vmatmul.msk.f32.vlgmr.msra.gmra.mxu1 %vm216_vm0, %v199_v12 }
  0x31   : > { %235 = vmatpush.msra.mxu0 %v200_v16  ;;  %p612_p1 = pnand %p611_p0, %p607_p7 }
  0x32   : > { %444 = vmatmul.msk.f32.vlgmr.msra.gmra.mxu0 %vm216_vm0, %v199_v12 }
  0xad   : > { %v257_v17 = vpop.f32.mrf.mxu1 }
  0xae   : > { %v304_v20 = vrot.slane %v257_v17, 7 }
  0xaf   : > { %v237_v18 = vpop.f32.mrf.mxu0 }
  0xb0   : > { %v308_v25 = vsel %vm307_vm1, %v237_v18, %v304_v20 }
  0xb1   : > { %v277_v21 = vpop.f32.mrf.mxu2  ;;  %v297_v22 = vpop.f32.mrf.mxu3 }
  0xb2   : > { %v305_v23 = vrot.slane %v277_v21, 6  ;;  %v306_v24 = vrot.slane %v297_v22, 5 }
  0xb4   : > { %v310_v26 = vsel %vm309_vm2, %v305_v23, %v306_v24 }
  0xb5   : > { %v312_v27 = vsel %vm311_vm3, %v308_v25, %v310_v26 }
  0xb6   : > { %318 = vst.msk [vmem:[%s196_s7] sm:$0xf] %vm316_vm4, %v312_v27 }
  0xb7   : > { %615 = shalt.err (!%p612_p1)
}
  0xb8   : > { %459 = dma.vmem_to_hbm [thread:$0]  (%p746_p8), %s335_s8, 64, %s337_s15, %s320_s12  }
  0xb9 PF: > { %s348_s17 = sand.u32 1, %s654_s9   ;;  %p470_p2 = pnand %p436_p13, %p750_p9 }
  0xba   : > { %s349_s4 = scalar_lea.sflag [#allocation4], %s348_s17 }
  0xbb   : > { %p471_p4 = pneg %p470_p2 }
  0xbd   : > { %649 = dma.done.wait (%p471_p4), %s349_s4, 64  }
  0xbe   : > { %651 = vsyncadd (%p471_p4), %s349_s4, 4294967232  ;;  %s19_s14 = sadd.s32 1, %s674_s14   ;;  %s878_s9 = smov %s658_s10 }
  0xbf   : > { %p16_p6 = scmp.ge.s32.totalorder %s19_s14, 4   ;;  %s879_s10 = smov %s662_s11 }
  0xc0   : > { %s880_s11 = smov %s788_s23  ;;  %s881_s12 = smov %s670_s13 }
  0xc1   : > { %s882_s13 = smov %s884_s30  ;;  %18 = sbr.rel (!%p16_p6) target bundleno = 7 (0x7), region = 78 }
  0xc6   :  { %355 = vsyncpa [#allocation3], 1 }
  0xc7   :  { %357 = vsyncpa [#allocation3 + $0x1], 1 }
  0xc8   :  { %358 = vsyncpa [#allocation6], 1 }
  0xc9   :  { %360 = vsyncpa [#allocation6 + $0x1], 1 }
  0xca   :  { %361 = vsyncpa [#allocation4], 1 }
  0xcb   :  { %363 = vsyncpa [#allocation4 + $0x1], 1 }

</bundles_post_ra>
